<compile_context>
chip_gen: v5e
topology: v5e:2x2
jax: 0.10.0
libtpu: 0.0.40
codegen_flags: <defaults>
</compile_context>

<pallas_src>
import jax
import jax.numpy as jnp
from jax.experimental import pallas as pl
from jax.experimental.pallas import tpu as pltpu


def _round_up(x, m):
    return ((x + m - 1) // m) * m


def _mlp_kernel(x_ref, w1_ref, b1_ref, w2_ref, b2_ref, w3_ref, b3_ref, o_ref):
    x = x_ref[...]                                                         # (tm, 128) bf16
    # fc1 applied twice in the PyTorch forward; folded into a single affine (W1@W1, b1@W1+b1)
    # in the wrapper, so the kernel does one matmul here.
    h1 = jnp.dot(x, w1_ref[...], preferred_element_type=jnp.float32) + b1_ref[...]
    l1 = jax.nn.sigmoid(h1)                                                # f32 activations
    h2 = jnp.dot(l1.astype(w2_ref.dtype), w2_ref[...],
                 preferred_element_type=jnp.float32) + b2_ref[...]
    l2 = jax.nn.sigmoid(h2)
    h3 = jnp.dot(l2.astype(w3_ref.dtype), w3_ref[...],
                 preferred_element_type=jnp.float32) + b3_ref[...]
    o_ref[...] = h3.astype(o_ref.dtype)                                    # (tm, 128) lane-dense


def linear_classifier_forward(x, w1, b1, w2, b2, w3, b3, *, tm=512,
                              mxu_dtype=jnp.bfloat16):
    B, D_in = x.shape
    H1 = w1.shape[1]          # 128
    H2 = w2.shape[1]          # 256
    n_classes = w3.shape[1]
    assert D_in == w1.shape[0] == H1, "fc1(fc1(x)) requires input_dims == (128,)"

    # --- Fold the double fc1 (exact: there is no nonlinearity between the two applications).
    w1_eff = jnp.dot(w1, w1, preferred_element_type=jnp.float32)
    b1_eff = jnp.dot(b1, w1, preferred_element_type=jnp.float32) + b1

    # --- Lane-pad the tiny classifier head to 128 so output stores are unmasked.
    n_pad = _round_up(n_classes, 128)
    w3_p = jnp.pad(w3, ((0, 0), (0, n_pad - n_classes)))
    b3_p = jnp.pad(b3, ((0, 0), (0, n_pad - n_classes)))

    # --- bf16 MXU inputs, f32 accumulation (biases stay f32).
    w1_m = w1_eff.astype(mxu_dtype)
    w2_m = w2.astype(mxu_dtype)
    w3_m = w3_p.astype(mxu_dtype)

    # --- Batch tiling: large tiles for MXU efficiency, multiple of 8, and keep >=2 grid
    #     steps when the batch allows it (v7x has 2 TensorCores sharing the parallel axis).
    if B >= 16:
        tm_eff = max(8, min(tm, _round_up(pl.cdiv(B, 2), 8)))
    else:
        tm_eff = _round_up(max(B, 1), 8)
    Bp = _round_up(B, tm_eff)
    x_p = jnp.pad(x, ((0, Bp - B), (0, 0))) if Bp != B else x
    x_m = x_p.astype(mxu_dtype)

    grid = (Bp // tm_eff,)
    out = pl.pallas_call(
        _mlp_kernel,
        out_shape=jax.ShapeDtypeStruct((Bp, n_pad), jnp.float32),
        grid_spec=pltpu.PrefetchScalarGridSpec(
            num_scalar_prefetch=0,
            grid=grid,
            in_specs=[
                pl.BlockSpec((tm_eff, D_in), lambda i: (i, 0)),    # x tile       (bf16)
                pl.BlockSpec((D_in, H1), lambda i: (0, 0)),        # W1eff        (bf16)
                pl.BlockSpec((1, H1), lambda i: (0, 0)),           # b1eff        (f32)
                pl.BlockSpec((H1, H2), lambda i: (0, 0)),          # W2           (bf16)
                pl.BlockSpec((1, H2), lambda i: (0, 0)),           # b2           (f32)
                pl.BlockSpec((H2, n_pad), lambda i: (0, 0)),       # W3 (padded)  (bf16)
                pl.BlockSpec((1, n_pad), lambda i: (0, 0)),        # b3 (padded)  (f32)
            ],
            out_specs=pl.BlockSpec((tm_eff, n_pad), lambda i: (i, 0)),
        ),
        compiler_params=pltpu.CompilerParams(
            dimension_semantics=("parallel",),
        ),
    )(x_m, w1_m, b1_eff, w2_m, b2, w3_m, b3_p)

    return out[:B, :n_classes]


def _reference_forward(x, w1, b1, w2, b2, w3, b3):
    # Literal f32 re-implementation of the PyTorch forward (fc1 applied twice).
    h = x @ w1 + b1
    h = h @ w1 + b1
    l1 = jax.nn.sigmoid(h)
    l2 = jax.nn.sigmoid(l1 @ w2 + b2)
    return l2 @ w3 + b3


if __name__ == "__main__":
    key = jax.random.PRNGKey(0)
    B = 16
    input_dim = 128   # input_dims must be (128,) for fc1(fc1(x)) to type-check
    n_classes = 10

    ks = jax.random.split(key, 7)
    x = jax.random.normal(ks[0], (B, input_dim), dtype=jnp.float32)

    # Deterministic parameter init (Kaiming-uniform-ish scale, like nn.Linear).
    def init_linear(kw, kb, fan_in, fan_out):
        bound = 1.0 / jnp.sqrt(fan_in)
        w = jax.random.uniform(kw, (fan_in, fan_out), jnp.float32, -bound, bound)
        b = jax.random.uniform(kb, (1, fan_out), jnp.float32, -bound, bound)
        return w, b

    w1, b1 = init_linear(ks[1], ks[2], input_dim, 128)
    w2, b2 = init_linear(ks[3], ks[4], 128, 256)
    w3, b3 = init_linear(ks[5], ks[6], 256, n_classes)

    out = linear_classifier_forward(x, w1, b1, w2, b2, w3, b3)
    out = jax.block_until_ready(out)

    ref = _reference_forward(x, w1, b1, w2, b2, w3, b3)
    assert out.shape == (B, n_classes)
    # bf16 MXU inputs + folded W1@W1 differ from the literal f32 reference only by rounding;
    # tolerance is loosened accordingly.
    assert jnp.allclose(out, ref, atol=5e-2, rtol=5e-2), "mismatch vs reference"

    print("KERNEL_OK")
</pallas_src>

<mosaic_0001>
module attributes {stable_mosaic.version = 11 : i64} {
  func.func @_mlp_kernel(%arg0: i32, %arg1: memref<8x128xbf16, #tpu.memory_space<vmem>>, %arg2: memref<128x128xbf16, #tpu.memory_space<vmem>>, %arg3: memref<1x128xf32, #tpu.memory_space<vmem>>, %arg4: memref<128x256xbf16, #tpu.memory_space<vmem>>, %arg5: memref<1x256xf32, #tpu.memory_space<vmem>>, %arg6: memref<256x128xbf16, #tpu.memory_space<vmem>>, %arg7: memref<1x128xf32, #tpu.memory_space<vmem>>, %arg8: memref<8x128xf32, #tpu.memory_space<vmem>>) attributes {dimension_semantics = [#tpu.dimension_semantics<parallel>], iteration_bounds = array<i64: 2>, scalar_prefetch = 0 : i64, scratch_operands = 0 : i64, tpu.core_type = #tpu.core_type<tc>, window_params = [{transform_indices = @transform_0, window_bounds = array<i64: 8, 128>}, {pipeline_mode = #tpu.pipeline_mode<synchronous>, transform_indices = @transform_1, window_bounds = array<i64: 128, 128>}, {pipeline_mode = #tpu.pipeline_mode<synchronous>, transform_indices = @transform_2, window_bounds = array<i64: 1, 128>}, {pipeline_mode = #tpu.pipeline_mode<synchronous>, transform_indices = @transform_3, window_bounds = array<i64: 128, 256>}, {pipeline_mode = #tpu.pipeline_mode<synchronous>, transform_indices = @transform_4, window_bounds = array<i64: 1, 256>}, {pipeline_mode = #tpu.pipeline_mode<synchronous>, transform_indices = @transform_5, window_bounds = array<i64: 256, 128>}, {pipeline_mode = #tpu.pipeline_mode<synchronous>, transform_indices = @transform_6, window_bounds = array<i64: 1, 128>}, {transform_indices = @transform_7, window_bounds = array<i64: 8, 128>}]} {
    %c0 = arith.constant 0 : index
    %c0_0 = arith.constant 0 : index
    %0 = vector.load %arg1[%c0, %c0_0] : memref<8x128xbf16, #tpu.memory_space<vmem>>, vector<8x128xbf16>
    %c0_1 = arith.constant 0 : index
    %c0_2 = arith.constant 0 : index
    %1 = vector.load %arg2[%c0_1, %c0_2] : memref<128x128xbf16, #tpu.memory_space<vmem>>, vector<128x128xbf16>
    %cst = arith.constant dense<0.000000e+00> : vector<8x128xf32>
    %2 = tpu.matmul %0, %1, %cst {dimension_numbers = #tpu.dot_dimension_numbers<[1], [0], [0], [1], [0, 0, 1, 1], [], []>} : vector<8x128xbf16>, vector<128x128xbf16>, vector<8x128xf32> -> vector<8x128xf32>
    %c0_3 = arith.constant 0 : index
    %c0_4 = arith.constant 0 : index
    %3 = vector.load %arg3[%c0_3, %c0_4] : memref<1x128xf32, #tpu.memory_space<vmem>>, vector<1x128xf32>
    %4 = vector.broadcast %3 : vector<1x128xf32> to vector<8x128xf32>
    %5 = arith.addf %2, %4 : vector<8x128xf32>
    %6 = arith.negf %5 : vector<8x128xf32>
    %7 = math.exp %6 : vector<8x128xf32>
    %cst_5 = arith.constant 1.000000e+00 : f32
    %8 = vector.broadcast %cst_5 : f32 to vector<8x128xf32>
    %9 = arith.addf %8, %7 : vector<8x128xf32>
    %10 = arith.divf %8, %9 : vector<8x128xf32>
    %11 = arith.truncf %10 : vector<8x128xf32> to vector<8x128xbf16>
    %c0_6 = arith.constant 0 : index
    %c0_7 = arith.constant 0 : index
    %12 = vector.load %arg4[%c0_6, %c0_7] : memref<128x256xbf16, #tpu.memory_space<vmem>>, vector<128x256xbf16>
    %cst_8 = arith.constant dense<0.000000e+00> : vector<8x256xf32>
    %13 = tpu.matmul %11, %12, %cst_8 {dimension_numbers = #tpu.dot_dimension_numbers<[1], [0], [0], [1], [0, 0, 1, 1], [], []>} : vector<8x128xbf16>, vector<128x256xbf16>, vector<8x256xf32> -> vector<8x256xf32>
    %c0_9 = arith.constant 0 : index
    %c0_10 = arith.constant 0 : index
    %14 = vector.load %arg5[%c0_9, %c0_10] : memref<1x256xf32, #tpu.memory_space<vmem>>, vector<1x256xf32>
    %15 = vector.broadcast %14 : vector<1x256xf32> to vector<8x256xf32>
    %16 = arith.addf %13, %15 : vector<8x256xf32>
    %17 = arith.negf %16 : vector<8x256xf32>
    %18 = math.exp %17 : vector<8x256xf32>
    %cst_11 = arith.constant 1.000000e+00 : f32
    %19 = vector.broadcast %cst_11 : f32 to vector<8x256xf32>
    %20 = arith.addf %19, %18 : vector<8x256xf32>
    %21 = arith.divf %19, %20 : vector<8x256xf32>
    %22 = arith.truncf %21 : vector<8x256xf32> to vector<8x256xbf16>
    %c0_12 = arith.constant 0 : index
    %c0_13 = arith.constant 0 : index
    %23 = vector.load %arg6[%c0_12, %c0_13] : memref<256x128xbf16, #tpu.memory_space<vmem>>, vector<256x128xbf16>
    %cst_14 = arith.constant dense<0.000000e+00> : vector<8x128xf32>
    %24 = tpu.matmul %22, %23, %cst_14 {dimension_numbers = #tpu.dot_dimension_numbers<[1], [0], [0], [1], [0, 0, 1, 1], [], []>} : vector<8x256xbf16>, vector<256x128xbf16>, vector<8x128xf32> -> vector<8x128xf32>
    %c0_15 = arith.constant 0 : index
    %c0_16 = arith.constant 0 : index
    %25 = vector.load %arg7[%c0_15, %c0_16] : memref<1x128xf32, #tpu.memory_space<vmem>>, vector<1x128xf32>
    %26 = vector.broadcast %25 : vector<1x128xf32> to vector<8x128xf32>
    %27 = arith.addf %24, %26 : vector<8x128xf32>
    %c0_17 = arith.constant 0 : index
    %c0_18 = arith.constant 0 : index
    %28 = vector.load %arg8[%c0_17, %c0_18] : memref<8x128xf32, #tpu.memory_space<vmem>>, vector<8x128xf32>
    tpu.vector_store %arg8[%c0_17, %c0_18], %27 {strides = array<i32>} : memref<8x128xf32, #tpu.memory_space<vmem>>, vector<8x128xf32>,
    return
  }
  func.func @transform_0(%arg0: i32) -> (i32, i32) {
    %c0_i32 = arith.constant 0 : i32
    %c0_i32_0 = arith.constant 0 : i32
    return %arg0, %c0_i32 : i32, i32
  }
  func.func @transform_1(%arg0: i32) -> (i32, i32) {
    %c0_i32 = arith.constant 0 : i32
    %c0_i32_0 = arith.constant 0 : i32
    %c0_i32_1 = arith.constant 0 : i32
    return %c0_i32, %c0_i32_0 : i32, i32
  }
  func.func @transform_2(%arg0: i32) -> (i32, i32) {
    %c0_i32 = arith.constant 0 : i32
    %c0_i32_0 = arith.constant 0 : i32
    %c0_i32_1 = arith.constant 0 : i32
    return %c0_i32, %c0_i32_0 : i32, i32
  }
  func.func @transform_3(%arg0: i32) -> (i32, i32) {
    %c0_i32 = arith.constant 0 : i32
    %c0_i32_0 = arith.constant 0 : i32
    %c0_i32_1 = arith.constant 0 : i32
    return %c0_i32, %c0_i32_0 : i32, i32
  }
  func.func @transform_4(%arg0: i32) -> (i32, i32) {
    %c0_i32 = arith.constant 0 : i32
    %c0_i32_0 = arith.constant 0 : i32
    %c0_i32_1 = arith.constant 0 : i32
    return %c0_i32, %c0_i32_0 : i32, i32
  }
  func.func @transform_5(%arg0: i32) -> (i32, i32) {
    %c0_i32 = arith.constant 0 : i32
    %c0_i32_0 = arith.constant 0 : i32
    %c0_i32_1 = arith.constant 0 : i32
    return %c0_i32, %c0_i32_0 : i32, i32
  }
  func.func @transform_6(%arg0: i32) -> (i32, i32) {
    %c0_i32 = arith.constant 0 : i32
    %c0_i32_0 = arith.constant 0 : i32
    %c0_i32_1 = arith.constant 0 : i32
    return %c0_i32, %c0_i32_0 : i32, i32
  }
  func.func @transform_7(%arg0: i32) -> (i32, i32) {
    %c0_i32 = arith.constant 0 : i32
    %c0_i32_0 = arith.constant 0 : i32
    return %arg0, %c0_i32 : i32, i32
  }
}

</mosaic_0001>

<bundles_post_ra>
// kernel: tpu_custom_call.1
= control target key start
LH: loop header
LB: loop body
LE: loop exit
PB: predicated region body
PF: predicated region fallthrough
CT: control target
= control target key end

     0   :  { %s1615_s0 = inlined_call_operand.hbm [shape: bf16[16,128], index: 0, kind: input, shape index: {}]   ;;  %s1616_s1 = inlined_call_operand.hbm [shape: bf16[128,128], index: 1, kind: input, shape index: {}]   ;;  %s1617_s2 = inlined_call_operand.vmem [shape: f32[1,128], index: 2, kind: input, shape index: {}]   ;;  %s1618_s3 = inlined_call_operand.hbm [shape: bf16[128,256], index: 3, kind: input, shape index: {}]   ;;  %s1619_s4 = inlined_call_operand.vmem [shape: f32[1,256], index: 4, kind: input, shape index: {}]   ;;  %s1620_s5 = inlined_call_operand.hbm [shape: bf16[256,128], index: 5, kind: input, shape index: {}]   ;;  %s1621_s6 = inlined_call_operand.vmem [shape: f32[1,128], index: 6, kind: input, shape index: {}]   ;;  %s1622_s7 = inlined_call_operand.hbm [shape: f32[16,128], index: 7, kind: output, shape index: {}]  }
   0x1   :  { %1623 = sst [smem:[#allocation15_spill]] %s1616_s1 }
   0x2   :  { %12 = vsyncpa [#allocation3], 0 }
   0x3   :  { %14 = vsyncpa [#allocation3 + $0x1], 0 }
   0x4   :  { %15 = vsyncpa [#allocation6], 0 }
   0x5   :  { %16 = vsyncpa [#allocation9], 0 }
   0x6   :  { %17 = vsyncpa [#allocation4], 0 }
   0x7   :  { %19 = vsyncpa [#allocation4 + $0x1], 0  ;;  %s1449_s24 = smov 0   ;;  %s1451_s25 = smov 0  }
   0x8   :  { %s1453_s26 = smov 0   ;;  %s1455_s27 = smov 0  }
   0x9 LB: > { %s1624_s1 = sld [smem:[#allocation15_spill]]  ;;  %s1473_s8 = sadd.s32 4294967295, %s1400_s27   ;;  %s1400_s27 = sphi %s1455_s27, %s1635_s27   ;;  %s1396_s26 = sphi %s1453_s26, %s1634_s26   ;;  %s1392_s25 = sphi %s1451_s25, %s1633_s25   ;;  %s1388_s24 = sphi %s1449_s24, %s1632_s24  }
   0xa   : > { %p891_p0 = scmp.ge.s32.totalorder %s1400_s27, 1  ;;  %p46_p1 = scmp.eq.s32.totalorder %s1473_s8, 0 }
   0xb   : > { %p208_p2 = scmp.lt.s32.totalorder %s1400_s27, 3  ;;  %s1402_s10 = smov [#allocation5]  }
   0xc   : > { %s221_s11 = sshll.u32 %s1402_s10, 4  ;;  %s236_s14 = sshll.u32 %s1618_s3, 4  ;;  %s222_s11 = int_to_ptr.vmem [resolvable:$true] %s221_s11  ;;  %s237_s14 = int_to_ptr.hbm [resolvable:$true] %s236_s14 }
   0xd   : > { %p1478_p3 = pnand %p891_p0, %p208_p2  ;;  %s1403_s16 = smov [#allocation7]  }
   0xe   : > { %s238_s17 = sshll.u32 %s1403_s16, 4  ;;  %s1404_s18 = smov 64   ;;  %s239_s17 = int_to_ptr.vmem [resolvable:$true] %s238_s17 }
   0xf   : > { %s219_s30 = sshll.u32 %s1624_s1, 4  ;;  %p1127_p4 = pneg %p1478_p3  ;;  %s220_s30 = int_to_ptr.hbm [resolvable:$true] %s219_s30 }
  0x10   : > { %s1405_s19 = smov 4   ;;  %s1406_s20 = smov 128  }
  0x11   : > { %p1490_p6 = pnand %p1127_p4, %p46_p1  ;;  %s1407_s21 = smov 8  }
  0x12   : > { %s253_s28 = sshll.u32 %s1620_s5, 4  ;;  %s1408_s29 = smov [#allocation8]   ;;  %s254_s28 = int_to_ptr.hbm [resolvable:$true] %s253_s28 }
  0x13   : > { %1130 = dma.hbm_to_vmem [thread:$0]  (!%p1490_p6), %s220_s30, 1024, %s222_s11, [#allocation6], %s1404_s18, %s1404_s18, %s1405_s19  }
  0x14   : > { %1133 = dma.hbm_to_vmem [thread:$0]  (!%p1490_p6), %s237_s14, 2048, %s239_s17, [#allocation6], %s1406_s20, %s1406_s20, %s1407_s21  }
  0x15   : > { %s255_s10 = sshll.u32 %s1408_s29, 4  ;;  %s890_s30 = sadd.s32 4294967294, %s1400_s27   ;;  %s256_s10 = int_to_ptr.vmem [resolvable:$true] %s255_s10 }
  0x16   : > { %1136 = dma.hbm_to_vmem [thread:$0]  (!%p1490_p6), %s254_s28, 2048, %s256_s10, [#allocation9], %s1404_s18, %s1404_s18, %s1405_s19  }
  0x17   : > { %s1505_s11 = sadd.s32 1, %s1400_s27   ;;  %s32_s12 = sadd.s32 1, %s1396_s26 }
  0x18   : > { %s29_s13 = ssub.s32 %s1400_s27, %s1505_s11  ;;  %p39_p7 = scmp.ne.s32.totalorder %s1396_s26, %s1392_s25 }
  0x19   : > { %p30_p8 = scmp.eq.s32.totalorder %s29_s13, 0  ;;  %p40_p9 = scmp.eq.s32.totalorder %s1400_s27, 0 }
  0x1a   : > { %p45_p10 = scmp.ne.s32.totalorder %s1392_s25, %s1388_s24  ;;  %p195_p11 = scmp.eq.s32.totalorder %s1473_s8, 1 }
  0x1b   : > { %s1517_s14 = scalar_select %p30_p8, %s1396_s26, %s32_s12  }
  0x1c   : > { %p1521_p12 = por %p46_p1, %p45_p10  ;;  %p1525_p13 = por %p195_p11, %p39_p7 }
  0x1d   : > { %p201_p0 = scmp.eq.s32.totalorder %s890_s30, 1  ;;  %p41_p2 = por %p40_p9, %p39_p7 }
  0x1e   : > { %s272_s17 = sand.u32 1, %s1396_s26   ;;  %p1148_p6 = scmp.lt.s32.totalorder %s1400_s27, 2 }
  0x1f   : > { %p1530_p4 = por %p201_p0, %p45_p10  ;;  %s896_s19 = sshll.u32 %s272_s17, 2 }
  0x20   : > { %s897_s20 = sshll.u32 %s1400_s27, 2  ;;  %s276_s29 = scalar_lea.vmem [#allocation2], %s896_s19 }
  0x21   : > { %s280_s23 = scalar_lea.hbm %s1615_s0, %s897_s20  ;;  %s284_s10 = sshll.u32 %s276_s29, 4  ;;  %s285_s10 = int_to_ptr.vmem [resolvable:$true] %s284_s10 }
  0x22   : > { %s282_s28 = sshll.u32 %s280_s23, 4  ;;  %p1539_p8 = pnand %p1148_p6, %p41_p2  ;;  %s283_s28 = int_to_ptr.hbm [resolvable:$true] %s282_s28 }
  0x23   : > { %s273_s12 = scalar_lea.sflag [#allocation3], %s272_s17  ;;  %s1296_s13 = sshra.s32 %s283_s28, 4  ;;  %s1297_s13 = int_to_ptr.hbm [resolvable:$true] %s1296_s13 }
  0x24   : > { %s1298_s1 = scalar_lea.hbm %s1297_s13, 4  ;;  %p1300_p9 = pneg %p1539_p8 }
  0x25   : > { %p1299_p7 = scmp.ne.s32.totalorder %s1297_s13, %s1298_s1  ;;  %s1303_s19 = scalar_lea.hbm %s1615_s0, 8 }
  0x26   : > { %p1304_p0 = scmp.lt.s32.totalorder %s1297_s13, %s1615_s0  ;;  %p1305_p2 = scmp.lt.s32.totalorder %s1303_s19, %s1298_s1 }
  0x27   : > { %p1301_p10 = pnand %p1300_p9, %p1299_p7 }
  0x28   : > { %p1306_p6 = por %p1305_p2, %p1304_p0 }
  0x29   : > { %p1302_p11 = pneg %p1301_p10 }
  0x2b   : > { %p1307_p5 = pnand %p1306_p6, %p1302_p11 }
  0x2d   : > { %1310 = shalt.err (!%p1307_p5)
}
  0x2e   : > { %1140 = dma.hbm_to_vmem [thread:$0]  (!%p1539_p8), %s283_s28, 64, %s285_s10, %s273_s12  }
  0x2f   : > { %293 = sbr.rel (%p1478_p3) target bundleno = 545 (0x221), region = 48  ;;  %s1556_s17 = sand.u32 (!%p1478_p3), 1, %s1392_s25  }
  0x30   : > { %s899_s29 = sshll.u32 (!%p1478_p3), %s1556_s17, 2  ;;  %s296_s20 = scalar_lea.sflag (!%p1478_p3), [#allocation3], %s1556_s17 }
  0x31   : > { %s299_s21 = scalar_lea.vmem (!%p1478_p3), [#allocation2], %s899_s29 }
  0x34   : > { %1371 = dma.done.wait (%p1521_p12), %s296_s20, 64  }
  0x35   : > { %1373 = vsyncadd (%p1521_p12), %s296_s20, 4294967232 }
  0x36   : > { %1375 = dma.done.wait (%p46_p1), [#allocation6], 3072  }
  0x37   : > { %1377 = vsyncadd (%p46_p1), [#allocation6], 4294964224 }
  0x38   : > { %1379 = dma.done.wait (%p46_p1), [#allocation9], 2048  }
  0x39   : > { %1381 = vsyncadd (%p46_p1), [#allocation9], 4294965248  ;;  %v1078_v0 = vld [vmem:[#allocation5 + $0x38] sm:$0xff]  ;;  %v1077_v1 = vld [vmem:[#allocation5 + $0x30] sm:$0xff]  ;;  %s903_s10 = sshll.u32 %s1556_s17, 3  ;;  %s1068_s30 = sshll.u32 %s1473_s8, 3 }
  0x3a   : > { %415 = vmatpush.bf16.msra.mxu0 %v1078_v0  ;;  %v1076_v2 = vld [vmem:[#allocation5 + $0x28] sm:$0xff]  ;;  %v1075_v3 = vld [vmem:[#allocation5 + $0x20] sm:$0xff]  ;;  %v1074_v4 = vld [vmem:[#allocation5 + $0x18] sm:$0xff]  ;;  %s786_s23 = scalar_lea.hbm %s1622_s7, %s1068_s30  ;;  %s345_s29 = scalar_lea.vmem [#allocation10], %s903_s10 }
  0x3b   : > { %v1073_v5 = vld [vmem:[#allocation5 + $0x10] sm:$0xff]  ;;  %v1072_v6 = vld [vmem:[#allocation5 + $0x8] sm:$0xff]  ;;  %v1071_v7 = vld [vmem:[#allocation5] sm:$0xff]  ;;  %s788_s20 = sshll.u32 %s345_s29, 4  ;;  %s776_s8 = scalar_lea.sflag [#allocation4], %s1556_s17  ;;  %s789_s20 = int_to_ptr.vmem [resolvable:$true] %s788_s20 }
  0x3c   : > { %v346_v8 = vld [vmem:[%s299_s21] sm:$0xf]  ;;  %v995_v9 = vld [vmem:[#allocation7 + $0x70] sm:$0xf]  ;;  %v1093_v11 = vld [vmem:[#allocation7 + $0x74] sm:$0xf] }
  0x3d   : > { %v1094_v10 = vld [vmem:[#allocation7 + $0x74] sm:$0xf0]  ;;  %v997_v13 = vld [vmem:[#allocation7 + $0x78] sm:$0xf0]  ;;  %v987_v15 = vld [vmem:[#allocation7 + $0x60] sm:$0xf] }
  0x3e   : > { %416 = vmatpush.bf16.msra.mxu0 %v1077_v1  ;;  %v996_v12 = vor.u32 %v1094_v10, %v995_v9  ;;  %v1000_v14 = vor.u32 %v1093_v11, %v997_v13  ;;  %v1092_v16 = vld [vmem:[#allocation7 + $0x64] sm:$0xf0]  ;;  %v1091_v17 = vld [vmem:[#allocation7 + $0x64] sm:$0xf]  ;;  %v989_v19 = vld [vmem:[#allocation7 + $0x68] sm:$0xf0] }
  0x3f   : > { %v988_v18 = vor.u32 %v1092_v16, %v987_v15  ;;  %v992_v20 = vor.u32 %v1091_v17, %v989_v19  ;;  %v979_v21 = vld [vmem:[#allocation7 + $0x50] sm:$0xf]  ;;  %v1090_v22 = vld [vmem:[#allocation7 + $0x54] sm:$0xf0]  ;;  %v1089_v23 = vld [vmem:[#allocation7 + $0x54] sm:$0xf] }
  0x40   : > { %550 = vmatpush.bf16.msra.mxu1 %v996_v12  ;;  %563 = vmatpush.bf16.msra.mxu2 %v1000_v14  ;;  %v980_v24 = vor.u32 %v1090_v22, %v979_v21  ;;  %v981_v25 = vld [vmem:[#allocation7 + $0x58] sm:$0xf0]  ;;  %v971_v27 = vld [vmem:[#allocation7 + $0x40] sm:$0xf]  ;;  %v1088_v28 = vld [vmem:[#allocation7 + $0x44] sm:$0xf0] }
  0x41   : > { %v984_v26 = vor.u32 %v1089_v23, %v981_v25  ;;  %v1087_v29 = vld [vmem:[#allocation7 + $0x44] sm:$0xf]  ;;  %v972_v30 = vor.u32 %v1088_v28, %v971_v27  ;;  %v973_v31 = vld [vmem:[#allocation7 + $0x48] sm:$0xf0]  ;;  %v963_v33 = vld [vmem:[#allocation7 + $0x30] sm:$0xf] }
  0x42   : > { %417 = vmatpush.bf16.msra.mxu0 %v1076_v2  ;;  %v976_v32 = vor.u32 %v1087_v29, %v973_v31  ;;  %v1086_v34 = vld [vmem:[#allocation7 + $0x34] sm:$0xf0]  ;;  %v1085_v35 = vld [vmem:[#allocation7 + $0x34] sm:$0xf]  ;;  %v965_v37 = vld [vmem:[#allocation7 + $0x38] sm:$0xf0] }
  0x43   : > { %v964_v36 = vor.u32 %v1086_v34, %v963_v33  ;;  %v955_v38 = vld [vmem:[#allocation7 + $0x20] sm:$0xf]  ;;  %v1084_v39 = vld [vmem:[#allocation7 + $0x24] sm:$0xf0]  ;;  %v968_v40 = vor.u32 %v1085_v35, %v965_v37  ;;  %v1083_v41 = vld [vmem:[#allocation7 + $0x24] sm:$0xf] }
  0x44   : > { %551 = vmatpush.bf16.msra.mxu1 %v988_v18  ;;  %564 = vmatpush.bf16.msra.mxu2 %v992_v20  ;;  %v957_v42 = vld [vmem:[#allocation7 + $0x28] sm:$0xf0]  ;;  %v956_v43 = vor.u32 %v1084_v39, %v955_v38  ;;  %v947_v45 = vld [vmem:[#allocation7 + $0x10] sm:$0xf]  ;;  %v1082_v46 = vld [vmem:[#allocation7 + $0x14] sm:$0xf0] }
  0x45   : > { %v960_v44 = vor.u32 %v1083_v41, %v957_v42  ;;  %v1081_v47 = vld [vmem:[#allocation7 + $0x14] sm:$0xf]  ;;  %v949_v48 = vld [vmem:[#allocation7 + $0x18] sm:$0xf0]  ;;  %v948_v49 = vor.u32 %v1082_v46, %v947_v45  ;;  %v939_v51 = vld [vmem:[#allocation7] sm:$0xf] }
  0x46   : > { %418 = vmatpush.bf16.msra.mxu0 %v1075_v3  ;;  %v952_v50 = vor.u32 %v1081_v47, %v949_v48  ;;  %v1080_v52 = vld [vmem:[#allocation7 + $0x4] sm:$0xf0]  ;;  %v1079_v53 = vld [vmem:[#allocation7 + $0x4] sm:$0xf]  ;;  %v941_v54 = vld [vmem:[#allocation7 + $0x8] sm:$0xf0] }
  0x47   : > { %v940_v55 = vor.u32 %v1080_v52, %v939_v51  ;;  %v944_v56 = vor.u32 %v1079_v53, %v941_v54  ;;  %v1192_v57 = vld [vmem:[%s1617_s2] ss:$0 sm:$0xff]  ;;  %v1101_v12 = vld [vmem:[#allocation8 + $0x30] sm:$0xff]  ;;  %v1100_v14 = vld [vmem:[#allocation8 + $0x28] sm:$0xff]  ;;  %s790_s21 = sshll.u32 %s786_s23, 4  ;;  %s1346_s30 = scalar_lea.hbm %s1622_s7, 16  ;;  %s791_s21 = int_to_ptr.hbm [resolvable:$true] %s790_s21 }
  0x48   : > { %552 = vmatpush.bf16.msra.mxu1 %v980_v24  ;;  %565 = vmatpush.bf16.msra.mxu2 %v984_v26  ;;  %v1102_v11 = vld [vmem:[#allocation8 + $0x38] sm:$0xff]  ;;  %v1109_v15 = vld [vmem:[#allocation8 + $0x70] sm:$0xff]  ;;  %v1099_v16 = vld [vmem:[#allocation8 + $0x20] sm:$0xff]  ;;  %s1340_s1 = sshra.s32 %s791_s21, 4  ;;  %s1341_s1 = int_to_ptr.hbm [resolvable:$true] %s1340_s1 }
  0x49   : > { %748 = vmatpush.bf16.msra.mxu3 %v1102_v11  ;;  %v1110_v13 = vld [vmem:[#allocation8 + $0x78] sm:$0xff]  ;;  %v1108_v17 = vld [vmem:[#allocation8 + $0x68] sm:$0xff]  ;;  %v1107_v19 = vld [vmem:[#allocation8 + $0x60] sm:$0xff]  ;;  %s1342_s9 = scalar_lea.hbm %s1341_s1, 8  ;;  %p1347_p12 = scmp.lt.s32.totalorder %s1341_s1, %s1622_s7 }
  0x4a   : > { %419 = vmatpush.bf16.msra.mxu0 %v1074_v4  ;;  %v1098_v18 = vld [vmem:[#allocation8 + $0x18] sm:$0xff]  ;;  %v1097_v20 = vld [vmem:[#allocation8 + $0x10] sm:$0xff]  ;;  %v1096_v22 = vld [vmem:[#allocation8 + $0x8] sm:$0xff]  ;;  %p1343_p1 = scmp.ne.s32.totalorder %s1341_s1, %s1342_s9  ;;  %p1348_p8 = scmp.lt.s32.totalorder %s1346_s30, %s1342_s9 }
  0x4b   : > { %v1106_v21 = vld [vmem:[#allocation8 + $0x58] sm:$0xff]  ;;  %v1105_v23 = vld [vmem:[#allocation8 + $0x50] sm:$0xff]  ;;  %v1095_v25 = vld [vmem:[#allocation8] sm:$0xff] }
  0x4c   : > { %553 = vmatpush.bf16.msra.mxu1 %v972_v30  ;;  %566 = vmatpush.bf16.msra.mxu2 %v976_v32  ;;  %v464_v24 = vld [vmem:[%s1619_s4] sm:$0x3]  ;;  %v1104_v26 = vld [vmem:[#allocation8 + $0x48] sm:$0xff]  ;;  %v1103_v30 = vld [vmem:[#allocation8 + $0x40] sm:$0xff]  ;;  %p1344_p3 = pnand %p1343_p1, %p1525_p13  ;;  %p1349_p7 = por %p1348_p8, %p1347_p12 }
  0x4d   : > { %749 = vmatpush.bf16.msra.mxu3 %v1101_v12  ;;  %v466_v27 = vperm.slane %v464_v24, 0  ;;  %v467_v32 = vperm.slane %v464_v24, 1 }
  0x4e   : > { %420 = vmatpush.bf16.msra.mxu0 %v1073_v5  ;;  %p1345_p5 = pneg %p1344_p3 }
  0x50   : > { %554 = vmatpush.bf16.msra.mxu1 %v964_v36  ;;  %567 = vmatpush.bf16.msra.mxu2 %v968_v40  ;;  %p1350_p9 = pnand %p1349_p7, %p1345_p5 }
  0x51   : > { %750 = vmatpush.bf16.msra.mxu3 %v1100_v14 }
  0x52   : > { %421 = vmatpush.bf16.msra.mxu0 %v1072_v6 }
  0x54   : > { %555 = vmatpush.bf16.msra.mxu1 %v956_v43  ;;  %568 = vmatpush.bf16.msra.mxu2 %v960_v44 }
  0x55   : > { %751 = vmatpush.bf16.msra.mxu3 %v1099_v16 }
  0x56   : > { %422 = vmatpush.bf16.msra.mxu0 %v1071_v7 }
  0x58   : > { %556 = vmatpush.bf16.msra.mxu1 %v948_v49  ;;  %569 = vmatpush.bf16.msra.mxu2 %v952_v50 }
  0x59   : > { %423 = vmatmul.bf16.vlgmr.msra.gmra.mxu0 %v346_v8  ;;  %752 = vmatpush.bf16.msra.mxu3 %v1098_v18 }
  0x5a   : > { %761 = vmatpush.bf16.msrb.mxu0 %v1110_v13 }
  0x5c   : > { %557 = vmatpush.bf16.msra.mxu1 %v940_v55  ;;  %570 = vmatpush.bf16.msra.mxu2 %v944_v56 }
  0x5d   : > { %753 = vmatpush.bf16.msra.mxu3 %v1097_v20 }
  0x5e   : > { %762 = vmatpush.bf16.msrb.mxu0 %v1109_v15 }
  0x61   : > { %754 = vmatpush.bf16.msra.mxu3 %v1096_v22 }
  0x62   : > { %763 = vmatpush.bf16.msrb.mxu0 %v1108_v17 }
  0x65   : > { %755 = vmatpush.bf16.msra.mxu3 %v1095_v25 }
  0x66   : > { %764 = vmatpush.bf16.msrb.mxu0 %v1107_v19 }
  0x6a   : > { %765 = vmatpush.bf16.msrb.mxu0 %v1106_v21 }
  0x6e   : > { %766 = vmatpush.bf16.msrb.mxu0 %v1105_v23 }
  0x72   : > { %767 = vmatpush.bf16.msrb.mxu0 %v1104_v26 }
  0x76   : > { %768 = vmatpush.bf16.msrb.mxu0 %v1103_v30 }
  0xd6   : > { %v424_v58 = vpop.f32.mrf.mxu0 }
  0xd7   : > { %v425_v59 = vadd.f32 %v1192_v57, %v424_v58 }
  0xd9   : > { %v936_v60 = vmul.f32 -1.442695, %v425_v59 }
  0xdb   : > { %1194 = vpow2.f32 %v936_v60 }
  0xde   : > { %v426_v61 = vpop.f32.mrf.mxu0 }
  0xe1   : > { %v1195_v62 = vpop.eup %1194 }
  0xe2   : > { %v431_v63 = vadd.f32 1.0, %v1195_v62 }
  0xe4   : > { %1196 = vrcp.f32 %v431_v63  ;;  %v443_v3 = vand.u32 2147483648, %v431_v63  ;;  %v441_v5 = vand.u32 2147483647, %v431_v63  ;;  %vm437_vm1 = vweird.f32 %v431_v63 }
  0xe6   : > { %v444_v7 = vor.u32 1.1754944e-38, %v443_v3  ;;  %vm442_vm3 = vcmp.eq.f32.partialorder %v441_v5, 8.507059e+37 }
  0xea   : > { %v1197_v0 = vpop.eup %1196 }
  0xeb   : > { %v433_v1 = vmul.f32 %v1197_v0, %v431_v63  ;;  %vm438_vm0 = vweird.f32 %v1197_v0 }
  0xec   : > { %vm439_vm2 = vmor %vm437_vm1, %vm438_vm0 }
  0xed   : > { %v434_v2 = vsub.f32 1.0, %v433_v1 }
  0xef   : > { %v435_v4 = vmul.f32 %v1197_v0, %v434_v2 }
  0xf1   : > { %v436_v6 = vadd.f32 %v1197_v0, %v435_v4 }
  0xf3   : > { %v440_v8 = vsel %vm439_vm2, %v1197_v0, %v436_v6  ;;  %v1193_v0 = vld [vmem:[%s1621_s6] ss:$0 sm:$0xff] }
  0xf4   : > { %v445_v9 = vsel %vm442_vm3, %v444_v7, %v440_v8 }
  0xf5   : > { %v447_v10 = vpack.c.bf16 %v445_v9, %v445_v9 }
  0xf7   : > { %558 = vmatmul.bf16.vlgmr.msra.gmra.mxu1 %v447_v10  ;;  %571 = vmatmul.bf16.vlgmr.msra.gmra.mxu2 %v447_v10 }
 0x174   : > { %v559_v28 = vpop.f32.mrf.mxu1 }
 0x175   : > { %v560_v29 = vadd.f32 %v559_v28, %v466_v27 }
 0x177   : > { %v1001_v31 = vmul.f32 -1.442695, %v560_v29 }
 0x179   : > { %1198 = vpow2.f32 %v1001_v31 }
 0x17a   : > { %v572_v33 = vpop.f32.mrf.mxu2 }
 0x17b   : > { %v573_v34 = vadd.f32 %v572_v33, %v467_v32 }
 0x17c   : > { %v561_v35 = vpop.f32.mrf.mxu1 }
 0x17d   : > { %v1002_v36 = vmul.f32 -1.442695, %v573_v34 }
 0x17f   : > { %v1199_v37 = vpop.eup %1198  ;;  %1200 = vpow2.f32 %v1002_v36 }
 0x180   : > { %v582_v38 = vadd.f32 1.0, %v1199_v37 }
 0x182   : > { %1202 = vrcp.f32 %v582_v38  ;;  %v574_v39 = vpop.f32.mrf.mxu2  ;;  %v595_v45 = vand.u32 2147483648, %v582_v38  ;;  %v593_v47 = vand.u32 2147483647, %v582_v38  ;;  %vm589_vm5 = vweird.f32 %v582_v38 }
 0x184   : > { %v596_v51 = vor.u32 1.1754944e-38, %v595_v45  ;;  %vm594_vm7 = vcmp.eq.f32.partialorder %v593_v47, 8.507059e+37 }
 0x185   : > { %v1201_v40 = vpop.eup %1200 }
 0x186   : > { %v583_v41 = vadd.f32 1.0, %v1201_v40 }
 0x188   : > { %v1203_v42 = vpop.eup %1202  ;;  %1204 = vrcp.f32 %v583_v41  ;;  %v610_v55 = vand.u32 2147483648, %v583_v41  ;;  %v608_v58 = vand.u32 2147483647, %v583_v41  ;;  %vm604_vm9 = vweird.f32 %v583_v41 }
 0x189   : > { %v585_v43 = vmul.f32 %v1203_v42, %v582_v38  ;;  %vm590_vm4 = vweird.f32 %v1203_v42 }
 0x18a   : > { %vm591_vm6 = vmor %vm589_vm5, %vm590_vm4  ;;  %v611_v60 = vor.u32 1.1754944e-38, %v610_v55  ;;  %vm609_vm11 = vcmp.eq.f32.partialorder %v608_v58, 8.507059e+37 }
 0x18b   : > { %v586_v44 = vsub.f32 1.0, %v585_v43 }
 0x18d   : > { %v587_v46 = vmul.f32 %v1203_v42, %v586_v44 }
 0x18e   : > { %v1205_v48 = vpop.eup %1204 }
 0x18f   : > { %v588_v49 = vadd.f32 %v1203_v42, %v587_v46  ;;  %v600_v50 = vmul.f32 %v1205_v48, %v583_v41  ;;  %vm605_vm8 = vweird.f32 %v1205_v48 }
 0x190   : > { %vm606_vm10 = vmor %vm604_vm9, %vm605_vm8 }
 0x191   : > { %v592_v52 = vsel %vm591_vm6, %v1203_v42, %v588_v49  ;;  %v601_v53 = vsub.f32 1.0, %v600_v50 }
 0x192   : > { %v597_v54 = vsel %vm594_vm7, %v596_v51, %v592_v52 }
 0x193   : > { %v614_v56 = vpack.c.bf16 %v597_v54, %v597_v54  ;;  %v602_v57 = vmul.f32 %v1205_v48, %v601_v53 }
 0x195   : > { %756 = vmatmul.bf16.vlgmr.msra.gmra.mxu3 %v614_v56  ;;  %v603_v59 = vadd.f32 %v1205_v48, %v602_v57 }
 0x197   : > { %v607_v61 = vsel %vm606_vm10, %v1205_v48, %v603_v59 }
 0x198   : > { %v612_v62 = vsel %vm609_vm11, %v611_v60, %v607_v61 }
 0x199   : > { %v615_v63 = vpack.c.bf16 %v612_v62, %v612_v62 }
 0x19b   : > { %769 = vmatmul.bf16.vlgmr.msrb.gmra.mxu0 %v615_v63 }
 0x218   : > { %v757_v1 = vpop.f32.mrf.mxu3  ;;  %v770_v2 = vpop.f32.mrf.mxu0 }
 0x219   : > { %v758_v3 = vadd.f32 %v1193_v0, %v757_v1 }
 0x21b   : > { %v771_v4 = vadd.f32 %v770_v2, %v758_v3 }
 0x21d   : > { %774 = vst [vmem:[%s345_s29] sm:$0xff] %v771_v4 }
 0x21e   : > { %1353 = shalt.err (!%p1350_p9)
}
 0x21f   : > { %1125 = dma.vmem_to_hbm [thread:$0]  (%p1525_p13), %s789_s20, 128, %s791_s21, %s776_s8  }
 0x220   : > { %v759_v5 = vpop.f32.mrf.mxu3  ;;  %v772_v6 = vpop.f32.mrf.mxu0 }
 0x221 PF: > { %s802_s17 = sand.u32 1, %s1388_s24   ;;  %p1631_p10 = scmp.ge.s32.totalorder %s1400_s27, 2 }
 0x222   : > { %s803_s13 = scalar_lea.sflag [#allocation4], %s802_s17 }
 0x223   : > { %p1142_p11 = pnand %p1631_p10, %p1530_p4 }
 0x225   : > { %p1143_p0 = pneg %p1142_p11 }
 0x227   : > { %1383 = dma.done.wait (%p1143_p0), %s803_s13, 128  }
 0x228   : > { %1385 = vsyncadd (%p1143_p0), %s803_s13, 4294967168  ;;  %p22_p13 = scmp.ge.s32.totalorder %s1505_s11, 4   ;;  %s1632_s24 = smov %s1392_s25 }
 0x229   : > { %s1633_s25 = smov %s1396_s26  ;;  %s1634_s26 = smov %s1517_s14 }
 0x22a   : > { %s1635_s27 = smov %s1505_s11  ;;  %24 = sbr.rel (!%p22_p13) target bundleno = 9 (0x9), region = 105 }
 0x22f   :  { %809 = vsyncpa [#allocation3], 1 }
 0x230   :  { %811 = vsyncpa [#allocation3 + $0x1], 1 }
 0x231   :  { %812 = vsyncpa [#allocation6], 1 }
 0x232   :  { %813 = vsyncpa [#allocation9], 1 }
 0x233   :  { %814 = vsyncpa [#allocation4], 1 }
 0x234   :  { %816 = vsyncpa [#allocation4 + $0x1], 1 }

</bundles_post_ra>
